<compile_context>
chip_gen: v5e
topology: v5e:2x2
jax: 0.10.0
libtpu: 0.0.40
codegen_flags: <defaults>
</compile_context>

<pallas_src>
import jax
import jax.numpy as jnp
from jax.experimental import pallas as pl
from jax.experimental.pallas import tpu as pltpu

_FAST_PATH_BYTES = 1 << 20          # < 1 MiB total: fused XLA elementwise wins
_TILE_BYTES = 4 * 1024 * 1024       # ~4 MiB per block, constant across dtypes
_LANE = 128
_WIDTHS = (1024, 512, 256, 128)     # candidate lane-dense last dims (widest first)


def _add2_relu_kernel(x_ref, o_ref):
    v = x_ref[...]
    v = v + 1          # keep the two separate +1 adds for bit-exact rounding vs torch
    v = v + 1
    o_ref[...] = jnp.maximum(v, 0)   # second relu is exactly idempotent -> omitted


def _add2_relu_reference(x):
    x = x + 1
    x = x + 1
    x = jnp.maximum(x, 0)
    return jnp.maximum(x, 0)


def test_submodule_forward(x: jax.Array) -> jax.Array:
    orig_shape = x.shape
    n = x.size
    itemsize = x.dtype.itemsize
    total_bytes = n * itemsize

    # Small-input fast path: pallas launch + reshape plumbing would dominate.
    if n == 0 or total_bytes < _FAST_PATH_BYTES:
        return _add2_relu_reference(x)

    # Widest lane-dense last dim that divides n -> zero-copy flatten/reshape.
    width = next((w for w in _WIDTHS if n % w == 0), None)

    if width is None:
        # Rare unaligned-by-128 case: pad flat length to a 128 multiple.
        # TODO(synk): replace this O(n) pad/slice with a lane-ragged masked block.
        width = _LANE
        n_pad = pl.cdiv(n, width) * width
        x_flat = jnp.pad(jnp.ravel(x), (0, n_pad - n))
        padded = True
    else:
        n_pad = n
        x_flat = jnp.ravel(x)        # pure reshape: no HBM copy
        padded = False

    rows = n_pad // width
    row_bytes = width * itemsize

    # ~4 MiB blocks, but keep >= 2 (even) grid steps so both v7x TensorCores get work.
    rows_per_cap = max(8, _TILE_BYTES // row_bytes)
    num_blocks = max(2, pl.cdiv(rows, rows_per_cap))
    if num_blocks % 2:
        num_blocks += 1              # even step count -> balanced megacore split
    tile_rows = max(8, 8 * pl.cdiv(pl.cdiv(rows, num_blocks), 8))   # sublane-aligned
    grid = (pl.cdiv(rows, tile_rows),)   # last block may be ragged; Pallas masks it

    x2d = x_flat.reshape(rows, width)

    # NOTE: input_output_aliases={0: 0} was considered but skipped: under jit the
    # input slab aliases a (non-donated) parameter buffer, so XLA would insert a
    # defensive O(n) copy instead of saving an allocation.
    out2d = pl.pallas_call(
        _add2_relu_kernel,
        out_shape=jax.ShapeDtypeStruct((rows, width), x.dtype),
        grid=grid,
        in_specs=[pl.BlockSpec((tile_rows, width), lambda i: (i, 0))],
        out_specs=pl.BlockSpec((tile_rows, width), lambda i: (i, 0)),
        compiler_params=pltpu.CompilerParams(
            dimension_semantics=("parallel",),
            # 4 buffers x ~4 MiB ~= 16 MiB; raise the scoped limit so v5e's
            # 16 MiB default neither rejects nor de-pipelines the kernel.
            vmem_limit_bytes=32 * 1024 * 1024,
        ),
        cost_estimate=pl.CostEstimate(
            flops=3 * n, transcendentals=0, bytes_accessed=2 * total_bytes),
    )(x2d)

    if padded:
        return out2d.reshape(-1)[:n].reshape(orig_shape)
    return out2d.reshape(orig_shape)


if __name__ == "__main__":
    key = jax.random.PRNGKey(0)
    k1, k2, k3 = jax.random.split(key, 3)

    # 1) small NCHW demo tensor (8 KiB) -> fused-XLA fast path
    x_small = jax.random.normal(k1, (2, 4, 16, 16), dtype=jnp.float32)
    # 2) 1 MiB, 1024-aligned -> Pallas path, grid=(2,), exact blocks
    x_aligned = jax.random.normal(k2, (8, 8, 64, 64), dtype=jnp.float32)
    # 3) ~1.4 MiB where rows aren't a block multiple -> Pallas path, ragged/masked last block
    x_ragged = jax.random.normal(k3, (10, 8, 72, 64), dtype=jnp.float32)

    for x in (x_small, x_aligned, x_ragged):
        y = test_submodule_forward(x)
        jax.block_until_ready(y)
        ref = _add2_relu_reference(x)
        assert y.shape == x.shape and y.dtype == x.dtype
        assert jnp.allclose(y, ref, atol=1e-6, rtol=0.0), float(jnp.max(jnp.abs(y - ref)))

    print("KERNEL_OK")
</pallas_src>

<mosaic_0001>
module attributes {stable_mosaic.version = 11 : i64} {
  func.func @_add2_relu_kernel(%arg0: i32, %arg1: memref<128x1024xf32, #tpu.memory_space<vmem>>, %arg2: memref<128x1024xf32, #tpu.memory_space<vmem>>) attributes {dimension_semantics = [#tpu.dimension_semantics<parallel>], iteration_bounds = array<i64: 2>, scalar_prefetch = 0 : i64, scratch_operands = 0 : i64, tpu.core_type = #tpu.core_type<tc>, window_params = [{transform_indices = @transform_0, window_bounds = array<i64: 128, 1024>}, {transform_indices = @transform_1, window_bounds = array<i64: 128, 1024>}]} {
    %c0 = arith.constant 0 : index
    %c0_0 = arith.constant 0 : index
    %0 = vector.load %arg1[%c0, %c0_0] : memref<128x1024xf32, #tpu.memory_space<vmem>>, vector<128x1024xf32>
    %cst = arith.constant 1.000000e+00 : f32
    %1 = vector.broadcast %cst : f32 to vector<128x1024xf32>
    %2 = arith.addf %0, %1 : vector<128x1024xf32>
    %cst_1 = arith.constant 1.000000e+00 : f32
    %3 = vector.broadcast %cst_1 : f32 to vector<128x1024xf32>
    %4 = arith.addf %2, %3 : vector<128x1024xf32>
    %cst_2 = arith.constant 0.000000e+00 : f32
    %5 = vector.broadcast %cst_2 : f32 to vector<128x1024xf32>
    %6 = arith.maximumf %4, %5 : vector<128x1024xf32>
    %c0_3 = arith.constant 0 : index
    %c0_4 = arith.constant 0 : index
    %7 = vector.load %arg2[%c0_3, %c0_4] : memref<128x1024xf32, #tpu.memory_space<vmem>>, vector<128x1024xf32>
    tpu.vector_store %arg2[%c0_3, %c0_4], %6 {strides = array<i32>} : memref<128x1024xf32, #tpu.memory_space<vmem>>, vector<128x1024xf32>,
    return
  }
  func.func @transform_0(%arg0: i32) -> (i32, i32) {
    %c0_i32 = arith.constant 0 : i32
    %c0_i32_0 = arith.constant 0 : i32
    return %arg0, %c0_i32 : i32, i32
  }
  func.func @transform_1(%arg0: i32) -> (i32, i32) {
    %c0_i32 = arith.constant 0 : i32
    %c0_i32_0 = arith.constant 0 : i32
    return %arg0, %c0_i32 : i32, i32
  }
}

</mosaic_0001>

<bundles_post_ra>
// kernel: tpu_custom_call.1
= control target key start
LH: loop header
LB: loop body
LE: loop exit
PB: predicated region body
PF: predicated region fallthrough
CT: control target
= control target key end

     0   :  { %6 = vsyncpa [#allocation3], 0  ;;  %s1444_s0 = inlined_call_operand.hbm [shape: f32[256,1024], index: 0, kind: input, shape index: {}]   ;;  %s1445_s1 = inlined_call_operand.hbm [shape: f32[256,1024], index: 1, kind: output, shape index: {}]  }
   0x1   :  { %8 = vsyncpa [#allocation3 + $0x1], 0 }
   0x2   :  { %9 = vsyncpa [#allocation4], 0 }
   0x3   :  { %11 = vsyncpa [#allocation4 + $0x1], 0  ;;  %s1052_s6 = smov 0   ;;  %s1054_s7 = smov 0  }
   0x4   :  { %s1056_s8 = smov 0   ;;  %s1058_s9 = smov 0  }
   0x5 LB: > { %s1073_s10 = sadd.s32 4294967295, %s1036_s9   ;;  %s870_s11 = sadd.s32 4294967294, %s1036_s9   ;;  %s1036_s9 = sphi %s1058_s9, %s1455_s9   ;;  %s1032_s8 = sphi %s1056_s8, %s1454_s8   ;;  %s1028_s7 = sphi %s1054_s7, %s1453_s7   ;;  %s1024_s6 = sphi %s1052_s6, %s1452_s6  }
   0x6   : > { %s1077_s12 = sadd.s32 1, %s1036_s9   ;;  %s24_s13 = sadd.s32 1, %s1032_s8 }
   0x7   : > { %s21_s14 = ssub.s32 %s1036_s9, %s1077_s12  ;;  %p31_p0 = scmp.ne.s32.totalorder %s1032_s8, %s1028_s7 }
   0x8   : > { %p22_p1 = scmp.eq.s32.totalorder %s21_s14, 0  ;;  %p32_p2 = scmp.eq.s32.totalorder %s1036_s9, 0 }
   0x9   : > { %p37_p3 = scmp.ne.s32.totalorder %s1028_s7, %s1024_s6  ;;  %p38_p4 = scmp.eq.s32.totalorder %s1073_s10, 0 }
   0xa   : > { %s1089_s15 = scalar_select %p22_p1, %s1032_s8, %s24_s13  }
   0xb   : > { %p1091_p5 = por %p32_p2, %p31_p0  ;;  %p1095_p6 = por %p38_p4, %p37_p3 }
   0xc   : > { %p61_p7 = scmp.eq.s32.totalorder %s1073_s10, 1  ;;  %p67_p8 = scmp.eq.s32.totalorder %s870_s11, 1 }
   0xd   : > { %p902_p10 = scmp.lt.s32.totalorder %s1036_s9, 2  ;;  %s87_s20 = sand.u32 1, %s1032_s8  }
   0xe   : > { %p1102_p11 = por %p61_p7, %p31_p0  ;;  %p1106_p12 = por %p67_p8, %p37_p3 }
   0xf   : > { %s887_s21 = sshll.u32 %s1036_s9, 10  ;;  %s873_s22 = sshll.u32 %s87_s20, 10 }
  0x10   : > { %s97_s25 = scalar_lea.hbm %s1444_s0, %s887_s21  ;;  %s91_s27 = scalar_lea.vmem [#allocation2], %s873_s22 }
  0x11   : > { %s98_s26 = sshll.u32 %s97_s25, 4  ;;  %s100_s28 = sshll.u32 %s91_s27, 4  ;;  %s99_s26 = int_to_ptr.hbm [resolvable:$true] %s98_s26  ;;  %s101_s28 = int_to_ptr.vmem [resolvable:$true] %s100_s28 }
  0x12   : > { %p1117_p13 = pnand %p902_p10, %p1091_p5  ;;  %p877_p0 = scmp.ge.s32.totalorder %s1036_s9, 1 }
  0x13   : > { %p108_p1 = scmp.lt.s32.totalorder %s1036_s9, 3  ;;  %s88_s30 = scalar_lea.sflag [#allocation3], %s87_s20 }
  0x14   : > { %s940_s2 = sshra.s32 %s99_s26, 4  ;;  %p944_p3 = pneg %p1117_p13  ;;  %s941_s2 = int_to_ptr.hbm [resolvable:$true] %s940_s2 }
  0x15   : > { %s942_s3 = scalar_lea.hbm %s941_s2, 1024  ;;  %s947_s11 = scalar_lea.hbm %s1444_s0, 2048 }
  0x16   : > { %p943_p2 = scmp.ne.s32.totalorder %s941_s2, %s942_s3  ;;  %p948_p5 = scmp.lt.s32.totalorder %s941_s2, %s1444_s0 }
  0x17   : > { %p949_p8 = scmp.lt.s32.totalorder %s947_s11, %s942_s3 }
  0x18   : > { %p945_p4 = pnand %p944_p3, %p943_p2 }
  0x19   : > { %p950_p10 = por %p949_p8, %p948_p5 }
  0x1a   : > { %p946_p7 = pneg %p945_p4 }
  0x1c   : > { %p951_p9 = pnand %p950_p10, %p946_p7 }
  0x1e   : > { %954 = shalt.err (!%p951_p9)
}
  0x1f   : > { %s1038_s16 = smov 1024   ;;  %s1039_s20 = smov 64  }
  0x20   : > { %897 = dma.hbm_to_vmem [thread:$0]  (!%p1117_p13), %s99_s26, 16384, %s101_s28, %s88_s30, %s1038_s16, %s1038_s16, %s1039_s20  }
  0x21   : > { %p109_p2 = pnand %p877_p0, %p108_p1 }
  0x22   : > { %s1138_s21 = sand.u32 (!%p109_p2), 1, %s1028_s7  }
  0x23   : > { %112 = sbr.rel (%p109_p2) target bundleno = 179 (0xb3), region = 24  ;;  %s878_s22 = sshll.u32 (!%p109_p2), %s1138_s21, 10 }
  0x24   : > { %s115_s23 = scalar_lea.sflag (!%p109_p2), [#allocation3], %s1138_s21  ;;  %s1144_s24 = scalar_lea.vmem (!%p109_p2), [#allocation2], %s878_s22 }
  0x28   : > { %1015 = dma.done.wait (%p1095_p6), %s115_s23, 16384  }
  0x29   : > { %1017 = vsyncadd (%p1095_p6), %s115_s23, 4294950912  ;;  %v140_v0 = vld [vmem:[%s1144_s24] sm:$0xff]  ;;  %v141_v1 = vld [vmem:[%s1144_s24 + $0x8] sm:$0xff]  ;;  %s1167_s17 = scalar_lea.vmem [#allocation5], %s878_s22  ;;  %s889_s25 = sshll.u32 %s1073_s10, 10 }
  0x2a   : > { %v142_v2 = vld [vmem:[%s1144_s24 + $0x10] sm:$0xff]  ;;  %v268_v3 = vadd.f32 1.0, %v140_v0  ;;  %v269_v4 = vadd.f32 1.0, %v141_v1  ;;  %v143_v6 = vld [vmem:[%s1144_s24 + $0x18] sm:$0xff]  ;;  %v144_v7 = vld [vmem:[%s1144_s24 + $0x20] sm:$0xff]  ;;  %s793_s28 = scalar_lea.hbm %s1445_s1, %s889_s25  ;;  %s794_s10 = sshll.u32 %s1167_s17, 4  ;;  %s795_s10 = int_to_ptr.vmem [resolvable:$true] %s794_s10 }
  0x2b   : > { %v270_v5 = vadd.f32 1.0, %v142_v2  ;;  %v145_v8 = vld [vmem:[%s1144_s24 + $0x28] sm:$0xff]  ;;  %v271_v9 = vadd.f32 1.0, %v143_v6  ;;  %v272_v10 = vadd.f32 1.0, %v144_v7  ;;  %v146_v12 = vld [vmem:[%s1144_s24 + $0x30] sm:$0xff]  ;;  %v147_v13 = vld [vmem:[%s1144_s24 + $0x38] sm:$0xff] }
  0x2c   : > { %v273_v11 = vadd.f32 1.0, %v145_v8  ;;  %v396_v14 = vadd.f32 1.0, %v268_v3  ;;  %v397_v15 = vadd.f32 1.0, %v269_v4  ;;  %v274_v17 = vadd.f32 1.0, %v146_v12  ;;  %v148_v18 = vld [vmem:[%s1144_s24 + $0x40] sm:$0xff]  ;;  %v149_v19 = vld [vmem:[%s1144_s24 + $0x48] sm:$0xff] }
  0x2d   : > { %v398_v16 = vadd.f32 1.0, %v270_v5  ;;  %v399_v20 = vadd.f32 1.0, %v271_v9  ;;  %v400_v21 = vadd.f32 1.0, %v272_v10  ;;  %v275_v23 = vadd.f32 1.0, %v147_v13  ;;  %v150_v24 = vld [vmem:[%s1144_s24 + $0x50] sm:$0xff]  ;;  %v151_v25 = vld [vmem:[%s1144_s24 + $0x58] sm:$0xff] }
  0x2e   : > { %v401_v22 = vadd.f32 1.0, %v273_v11  ;;  %v524_v26 = vmax.f32 %v396_v14, 0.0  ;;  %v525_v27 = vmax.f32 %v397_v15, 0.0  ;;  %v402_v29 = vadd.f32 1.0, %v274_v17  ;;  %v152_v30 = vld [vmem:[%s1144_s24 + $0x60] sm:$0xff]  ;;  %v153_v31 = vld [vmem:[%s1144_s24 + $0x68] sm:$0xff] }
  0x2f   : > { %v526_v28 = vmax.f32 %v398_v16, 0.0  ;;  %v527_v32 = vmax.f32 %v399_v20, 0.0  ;;  %v528_v33 = vmax.f32 %v400_v21, 0.0  ;;  %v403_v34 = vadd.f32 1.0, %v275_v23  ;;  %v154_v35 = vld [vmem:[%s1144_s24 + $0x70] sm:$0xff]  ;;  %v155_v40 = vld [vmem:[%s1144_s24 + $0x78] sm:$0xff] }
  0x30   : > { %652 = vst [vmem:[%s1167_s17] sm:$0xff] %v524_v26  ;;  %v529_v36 = vmax.f32 %v401_v22, 0.0  ;;  %v276_v37 = vadd.f32 1.0, %v148_v18  ;;  %v277_v38 = vadd.f32 1.0, %v149_v19  ;;  %v278_v39 = vadd.f32 1.0, %v150_v24  ;;  %v156_v49 = vld [vmem:[%s1144_s24 + $0x80] sm:$0xff]  ;;  %v157_v53 = vld [vmem:[%s1144_s24 + $0x88] sm:$0xff] }
  0x31   : > { %653 = vst [vmem:[%s1167_s17 + $0x8] sm:$0xff] %v525_v27  ;;  %v530_v41 = vmax.f32 %v402_v29, 0.0  ;;  %v279_v42 = vadd.f32 1.0, %v151_v25  ;;  %v280_v43 = vadd.f32 1.0, %v152_v30  ;;  %v281_v44 = vadd.f32 1.0, %v153_v31  ;;  %v158_v54 = vld [vmem:[%s1144_s24 + $0x90] sm:$0xff] }
  0x32   : > { %654 = vst [vmem:[%s1167_s17 + $0x10] sm:$0xff] %v526_v28  ;;  %v404_v45 = vadd.f32 1.0, %v276_v37  ;;  %v405_v46 = vadd.f32 1.0, %v277_v38  ;;  %v406_v47 = vadd.f32 1.0, %v278_v39  ;;  %v282_v48 = vadd.f32 1.0, %v154_v35  ;;  %v159_v57 = vld [vmem:[%s1144_s24 + $0x98] sm:$0xff] }
  0x33   : > { %655 = vst [vmem:[%s1167_s17 + $0x18] sm:$0xff] %v527_v32  ;;  %v531_v50 = vmax.f32 %v403_v34, 0.0  ;;  %v407_v51 = vadd.f32 1.0, %v279_v42  ;;  %v283_v52 = vadd.f32 1.0, %v155_v40  ;;  %v408_v56 = vadd.f32 1.0, %v280_v43  ;;  %v160_v61 = vld [vmem:[%s1144_s24 + $0xa0] sm:$0xff] }
  0x34   : > { %656 = vst [vmem:[%s1167_s17 + $0x20] sm:$0xff] %v528_v33  ;;  %v532_v55 = vmax.f32 %v404_v45, 0.0  ;;  %v533_v58 = vmax.f32 %v405_v46, 0.0  ;;  %v534_v59 = vmax.f32 %v406_v47, 0.0  ;;  %v409_v60 = vadd.f32 1.0, %v281_v44  ;;  %v161_v2 = vld [vmem:[%s1144_s24 + $0xa8] sm:$0xff] }
  0x35   : > { %657 = vst [vmem:[%s1167_s17 + $0x28] sm:$0xff] %v529_v36  ;;  %v410_v62 = vadd.f32 1.0, %v282_v48  ;;  %v284_v63 = vadd.f32 1.0, %v156_v49  ;;  %v285_v0 = vadd.f32 1.0, %v157_v53  ;;  %v286_v1 = vadd.f32 1.0, %v158_v54  ;;  %v162_v6 = vld [vmem:[%s1144_s24 + $0xb0] sm:$0xff] }
  0x36   : > { %658 = vst [vmem:[%s1167_s17 + $0x30] sm:$0xff] %v530_v41  ;;  %v535_v3 = vmax.f32 %v407_v51, 0.0  ;;  %v411_v4 = vadd.f32 1.0, %v283_v52  ;;  %v287_v5 = vadd.f32 1.0, %v159_v57  ;;  %v536_v7 = vmax.f32 %v408_v56, 0.0  ;;  %v163_v10 = vld [vmem:[%s1144_s24 + $0xb8] sm:$0xff] }
  0x37   : > { %659 = vst [vmem:[%s1167_s17 + $0x38] sm:$0xff] %v531_v50  ;;  %v412_v8 = vadd.f32 1.0, %v284_v63  ;;  %v288_v9 = vadd.f32 1.0, %v160_v61  ;;  %v537_v11 = vmax.f32 %v409_v60, 0.0  ;;  %v413_v12 = vadd.f32 1.0, %v285_v0  ;;  %v164_v14 = vld [vmem:[%s1144_s24 + $0xc0] sm:$0xff] }
  0x38   : > { %660 = vst [vmem:[%s1167_s17 + $0x40] sm:$0xff] %v532_v55  ;;  %v289_v13 = vadd.f32 1.0, %v161_v2  ;;  %v538_v15 = vmax.f32 %v410_v62, 0.0  ;;  %v414_v16 = vadd.f32 1.0, %v286_v1  ;;  %v290_v17 = vadd.f32 1.0, %v162_v6  ;;  %v165_v18 = vld [vmem:[%s1144_s24 + $0xc8] sm:$0xff] }
  0x39   : > { %661 = vst [vmem:[%s1167_s17 + $0x48] sm:$0xff] %v533_v58  ;;  %v539_v19 = vmax.f32 %v411_v4, 0.0  ;;  %v415_v20 = vadd.f32 1.0, %v287_v5  ;;  %v291_v21 = vadd.f32 1.0, %v163_v10  ;;  %v166_v22 = vld [vmem:[%s1144_s24 + $0xd0] sm:$0xff]  ;;  %v540_v23 = vmax.f32 %v412_v8, 0.0 }
  0x3a   : > { %662 = vst [vmem:[%s1167_s17 + $0x50] sm:$0xff] %v534_v59  ;;  %v416_v24 = vadd.f32 1.0, %v288_v9  ;;  %v292_v25 = vadd.f32 1.0, %v164_v14  ;;  %v167_v26 = vld [vmem:[%s1144_s24 + $0xd8] sm:$0xff]  ;;  %v541_v27 = vmax.f32 %v413_v12, 0.0  ;;  %v417_v28 = vadd.f32 1.0, %v289_v13 }
  0x3b   : > { %663 = vst [vmem:[%s1167_s17 + $0x58] sm:$0xff] %v535_v3  ;;  %v293_v29 = vadd.f32 1.0, %v165_v18  ;;  %v168_v30 = vld [vmem:[%s1144_s24 + $0xe0] sm:$0xff]  ;;  %v542_v31 = vmax.f32 %v414_v16, 0.0  ;;  %v418_v32 = vadd.f32 1.0, %v290_v17  ;;  %v294_v33 = vadd.f32 1.0, %v166_v22 }
  0x3c   : > { %664 = vst [vmem:[%s1167_s17 + $0x60] sm:$0xff] %v536_v7  ;;  %v169_v34 = vld [vmem:[%s1144_s24 + $0xe8] sm:$0xff]  ;;  %v543_v35 = vmax.f32 %v415_v20, 0.0  ;;  %v419_v36 = vadd.f32 1.0, %v291_v21  ;;  %v295_v37 = vadd.f32 1.0, %v167_v26  ;;  %v170_v38 = vld [vmem:[%s1144_s24 + $0xf0] sm:$0xff] }
  0x3d   : > { %665 = vst [vmem:[%s1167_s17 + $0x68] sm:$0xff] %v537_v11  ;;  %v544_v39 = vmax.f32 %v416_v24, 0.0  ;;  %v420_v40 = vadd.f32 1.0, %v292_v25  ;;  %v296_v41 = vadd.f32 1.0, %v168_v30  ;;  %v171_v42 = vld [vmem:[%s1144_s24 + $0xf8] sm:$0xff]  ;;  %v545_v43 = vmax.f32 %v417_v28, 0.0 }
  0x3e   : > { %666 = vst [vmem:[%s1167_s17 + $0x70] sm:$0xff] %v538_v15  ;;  %v421_v44 = vadd.f32 1.0, %v293_v29  ;;  %v297_v45 = vadd.f32 1.0, %v169_v34  ;;  %v172_v46 = vld [vmem:[%s1144_s24 + $0x100] sm:$0xff]  ;;  %v546_v47 = vmax.f32 %v418_v32, 0.0  ;;  %v422_v48 = vadd.f32 1.0, %v294_v33 }
  0x3f   : > { %667 = vst [vmem:[%s1167_s17 + $0x78] sm:$0xff] %v539_v19  ;;  %v298_v49 = vadd.f32 1.0, %v170_v38  ;;  %v173_v50 = vld [vmem:[%s1144_s24 + $0x108] sm:$0xff]  ;;  %v547_v51 = vmax.f32 %v419_v36, 0.0  ;;  %v423_v52 = vadd.f32 1.0, %v295_v37  ;;  %v299_v53 = vadd.f32 1.0, %v171_v42 }
  0x40   : > { %668 = vst [vmem:[%s1167_s17 + $0x80] sm:$0xff] %v540_v23  ;;  %v174_v54 = vld [vmem:[%s1144_s24 + $0x110] sm:$0xff]  ;;  %v548_v55 = vmax.f32 %v420_v40, 0.0  ;;  %v424_v56 = vadd.f32 1.0, %v296_v41  ;;  %v300_v57 = vadd.f32 1.0, %v172_v46  ;;  %v175_v58 = vld [vmem:[%s1144_s24 + $0x118] sm:$0xff] }
  0x41   : > { %669 = vst [vmem:[%s1167_s17 + $0x88] sm:$0xff] %v541_v27  ;;  %v549_v59 = vmax.f32 %v421_v44, 0.0  ;;  %v425_v60 = vadd.f32 1.0, %v297_v45  ;;  %v301_v61 = vadd.f32 1.0, %v173_v50  ;;  %v176_v62 = vld [vmem:[%s1144_s24 + $0x120] sm:$0xff]  ;;  %v550_v63 = vmax.f32 %v422_v48, 0.0 }
  0x42   : > { %670 = vst [vmem:[%s1167_s17 + $0x90] sm:$0xff] %v542_v31  ;;  %v426_v0 = vadd.f32 1.0, %v298_v49  ;;  %v302_v1 = vadd.f32 1.0, %v174_v54  ;;  %v177_v2 = vld [vmem:[%s1144_s24 + $0x128] sm:$0xff]  ;;  %v551_v3 = vmax.f32 %v423_v52, 0.0  ;;  %v427_v4 = vadd.f32 1.0, %v299_v53 }
  0x43   : > { %671 = vst [vmem:[%s1167_s17 + $0x98] sm:$0xff] %v543_v35  ;;  %v303_v5 = vadd.f32 1.0, %v175_v58  ;;  %v178_v6 = vld [vmem:[%s1144_s24 + $0x130] sm:$0xff]  ;;  %v552_v7 = vmax.f32 %v424_v56, 0.0  ;;  %v428_v8 = vadd.f32 1.0, %v300_v57  ;;  %v304_v9 = vadd.f32 1.0, %v176_v62 }
  0x44   : > { %672 = vst [vmem:[%s1167_s17 + $0xa0] sm:$0xff] %v544_v39  ;;  %v179_v10 = vld [vmem:[%s1144_s24 + $0x138] sm:$0xff]  ;;  %v553_v11 = vmax.f32 %v425_v60, 0.0  ;;  %v429_v12 = vadd.f32 1.0, %v301_v61  ;;  %v305_v13 = vadd.f32 1.0, %v177_v2  ;;  %v180_v14 = vld [vmem:[%s1144_s24 + $0x140] sm:$0xff] }
  0x45   : > { %673 = vst [vmem:[%s1167_s17 + $0xa8] sm:$0xff] %v545_v43  ;;  %v554_v15 = vmax.f32 %v426_v0, 0.0  ;;  %v430_v16 = vadd.f32 1.0, %v302_v1  ;;  %v306_v17 = vadd.f32 1.0, %v178_v6  ;;  %v181_v18 = vld [vmem:[%s1144_s24 + $0x148] sm:$0xff]  ;;  %v555_v19 = vmax.f32 %v427_v4, 0.0 }
  0x46   : > { %674 = vst [vmem:[%s1167_s17 + $0xb0] sm:$0xff] %v546_v47  ;;  %v431_v20 = vadd.f32 1.0, %v303_v5  ;;  %v307_v21 = vadd.f32 1.0, %v179_v10  ;;  %v182_v22 = vld [vmem:[%s1144_s24 + $0x150] sm:$0xff]  ;;  %v556_v23 = vmax.f32 %v428_v8, 0.0  ;;  %v432_v24 = vadd.f32 1.0, %v304_v9 }
  0x47   : > { %675 = vst [vmem:[%s1167_s17 + $0xb8] sm:$0xff] %v547_v51  ;;  %v308_v25 = vadd.f32 1.0, %v180_v14  ;;  %v183_v26 = vld [vmem:[%s1144_s24 + $0x158] sm:$0xff]  ;;  %v557_v27 = vmax.f32 %v429_v12, 0.0  ;;  %v433_v28 = vadd.f32 1.0, %v305_v13  ;;  %v309_v29 = vadd.f32 1.0, %v181_v18 }
  0x48   : > { %676 = vst [vmem:[%s1167_s17 + $0xc0] sm:$0xff] %v548_v55  ;;  %v184_v30 = vld [vmem:[%s1144_s24 + $0x160] sm:$0xff]  ;;  %v558_v31 = vmax.f32 %v430_v16, 0.0  ;;  %v434_v32 = vadd.f32 1.0, %v306_v17  ;;  %v310_v33 = vadd.f32 1.0, %v182_v22  ;;  %v185_v34 = vld [vmem:[%s1144_s24 + $0x168] sm:$0xff] }
  0x49   : > { %677 = vst [vmem:[%s1167_s17 + $0xc8] sm:$0xff] %v549_v59  ;;  %v559_v35 = vmax.f32 %v431_v20, 0.0  ;;  %v435_v36 = vadd.f32 1.0, %v307_v21  ;;  %v311_v37 = vadd.f32 1.0, %v183_v26  ;;  %v186_v38 = vld [vmem:[%s1144_s24 + $0x170] sm:$0xff]  ;;  %v560_v39 = vmax.f32 %v432_v24, 0.0 }
  0x4a   : > { %678 = vst [vmem:[%s1167_s17 + $0xd0] sm:$0xff] %v550_v63  ;;  %v436_v40 = vadd.f32 1.0, %v308_v25  ;;  %v312_v41 = vadd.f32 1.0, %v184_v30  ;;  %v187_v42 = vld [vmem:[%s1144_s24 + $0x178] sm:$0xff]  ;;  %v561_v43 = vmax.f32 %v433_v28, 0.0  ;;  %v437_v44 = vadd.f32 1.0, %v309_v29 }
  0x4b   : > { %679 = vst [vmem:[%s1167_s17 + $0xd8] sm:$0xff] %v551_v3  ;;  %v313_v45 = vadd.f32 1.0, %v185_v34  ;;  %v188_v46 = vld [vmem:[%s1144_s24 + $0x180] sm:$0xff]  ;;  %v562_v47 = vmax.f32 %v434_v32, 0.0  ;;  %v438_v48 = vadd.f32 1.0, %v310_v33  ;;  %v314_v49 = vadd.f32 1.0, %v186_v38 }
  0x4c   : > { %680 = vst [vmem:[%s1167_s17 + $0xe0] sm:$0xff] %v552_v7  ;;  %v189_v50 = vld [vmem:[%s1144_s24 + $0x188] sm:$0xff]  ;;  %v563_v51 = vmax.f32 %v435_v36, 0.0  ;;  %v439_v52 = vadd.f32 1.0, %v311_v37  ;;  %v315_v53 = vadd.f32 1.0, %v187_v42  ;;  %v190_v54 = vld [vmem:[%s1144_s24 + $0x190] sm:$0xff] }
  0x4d   : > { %681 = vst [vmem:[%s1167_s17 + $0xe8] sm:$0xff] %v553_v11  ;;  %v564_v55 = vmax.f32 %v436_v40, 0.0  ;;  %v440_v56 = vadd.f32 1.0, %v312_v41  ;;  %v316_v57 = vadd.f32 1.0, %v188_v46  ;;  %v191_v58 = vld [vmem:[%s1144_s24 + $0x198] sm:$0xff]  ;;  %v565_v59 = vmax.f32 %v437_v44, 0.0 }
  0x4e   : > { %682 = vst [vmem:[%s1167_s17 + $0xf0] sm:$0xff] %v554_v15  ;;  %v441_v60 = vadd.f32 1.0, %v313_v45  ;;  %v317_v61 = vadd.f32 1.0, %v189_v50  ;;  %v192_v62 = vld [vmem:[%s1144_s24 + $0x1a0] sm:$0xff]  ;;  %v566_v63 = vmax.f32 %v438_v48, 0.0  ;;  %v442_v0 = vadd.f32 1.0, %v314_v49 }
  0x4f   : > { %683 = vst [vmem:[%s1167_s17 + $0xf8] sm:$0xff] %v555_v19  ;;  %v318_v1 = vadd.f32 1.0, %v190_v54  ;;  %v193_v2 = vld [vmem:[%s1144_s24 + $0x1a8] sm:$0xff]  ;;  %v567_v3 = vmax.f32 %v439_v52, 0.0  ;;  %v443_v4 = vadd.f32 1.0, %v315_v53  ;;  %v319_v5 = vadd.f32 1.0, %v191_v58 }
  0x50   : > { %684 = vst [vmem:[%s1167_s17 + $0x100] sm:$0xff] %v556_v23  ;;  %v194_v6 = vld [vmem:[%s1144_s24 + $0x1b0] sm:$0xff]  ;;  %v568_v7 = vmax.f32 %v440_v56, 0.0  ;;  %v444_v8 = vadd.f32 1.0, %v316_v57  ;;  %v320_v9 = vadd.f32 1.0, %v192_v62  ;;  %v195_v10 = vld [vmem:[%s1144_s24 + $0x1b8] sm:$0xff] }
  0x51   : > { %685 = vst [vmem:[%s1167_s17 + $0x108] sm:$0xff] %v557_v27  ;;  %v569_v11 = vmax.f32 %v441_v60, 0.0  ;;  %v445_v12 = vadd.f32 1.0, %v317_v61  ;;  %v321_v13 = vadd.f32 1.0, %v193_v2  ;;  %v196_v14 = vld [vmem:[%s1144_s24 + $0x1c0] sm:$0xff]  ;;  %v570_v15 = vmax.f32 %v442_v0, 0.0 }
  0x52   : > { %686 = vst [vmem:[%s1167_s17 + $0x110] sm:$0xff] %v558_v31  ;;  %v446_v16 = vadd.f32 1.0, %v318_v1  ;;  %v322_v17 = vadd.f32 1.0, %v194_v6  ;;  %v197_v18 = vld [vmem:[%s1144_s24 + $0x1c8] sm:$0xff]  ;;  %v571_v19 = vmax.f32 %v443_v4, 0.0  ;;  %v447_v20 = vadd.f32 1.0, %v319_v5 }
  0x53   : > { %687 = vst [vmem:[%s1167_s17 + $0x118] sm:$0xff] %v559_v35  ;;  %v323_v21 = vadd.f32 1.0, %v195_v10  ;;  %v198_v22 = vld [vmem:[%s1144_s24 + $0x1d0] sm:$0xff]  ;;  %v572_v23 = vmax.f32 %v444_v8, 0.0  ;;  %v448_v24 = vadd.f32 1.0, %v320_v9  ;;  %v324_v25 = vadd.f32 1.0, %v196_v14 }
  0x54   : > { %688 = vst [vmem:[%s1167_s17 + $0x120] sm:$0xff] %v560_v39  ;;  %v199_v26 = vld [vmem:[%s1144_s24 + $0x1d8] sm:$0xff]  ;;  %v573_v27 = vmax.f32 %v445_v12, 0.0  ;;  %v449_v28 = vadd.f32 1.0, %v321_v13  ;;  %v325_v29 = vadd.f32 1.0, %v197_v18  ;;  %v200_v30 = vld [vmem:[%s1144_s24 + $0x1e0] sm:$0xff] }
  0x55   : > { %689 = vst [vmem:[%s1167_s17 + $0x128] sm:$0xff] %v561_v43  ;;  %v574_v31 = vmax.f32 %v446_v16, 0.0  ;;  %v450_v32 = vadd.f32 1.0, %v322_v17  ;;  %v326_v33 = vadd.f32 1.0, %v198_v22  ;;  %v201_v34 = vld [vmem:[%s1144_s24 + $0x1e8] sm:$0xff]  ;;  %v575_v35 = vmax.f32 %v447_v20, 0.0 }
  0x56   : > { %690 = vst [vmem:[%s1167_s17 + $0x130] sm:$0xff] %v562_v47  ;;  %v451_v36 = vadd.f32 1.0, %v323_v21  ;;  %v327_v37 = vadd.f32 1.0, %v199_v26  ;;  %v202_v38 = vld [vmem:[%s1144_s24 + $0x1f0] sm:$0xff]  ;;  %v576_v39 = vmax.f32 %v448_v24, 0.0  ;;  %v452_v40 = vadd.f32 1.0, %v324_v25 }
  0x57   : > { %691 = vst [vmem:[%s1167_s17 + $0x138] sm:$0xff] %v563_v51  ;;  %v328_v41 = vadd.f32 1.0, %v200_v30  ;;  %v203_v42 = vld [vmem:[%s1144_s24 + $0x1f8] sm:$0xff]  ;;  %v577_v43 = vmax.f32 %v449_v28, 0.0  ;;  %v453_v44 = vadd.f32 1.0, %v325_v29  ;;  %v329_v45 = vadd.f32 1.0, %v201_v34 }
  0x58   : > { %692 = vst [vmem:[%s1167_s17 + $0x140] sm:$0xff] %v564_v55  ;;  %v204_v46 = vld [vmem:[%s1144_s24 + $0x200] sm:$0xff]  ;;  %v578_v47 = vmax.f32 %v450_v32, 0.0  ;;  %v454_v48 = vadd.f32 1.0, %v326_v33  ;;  %v330_v49 = vadd.f32 1.0, %v202_v38  ;;  %v205_v50 = vld [vmem:[%s1144_s24 + $0x208] sm:$0xff] }
  0x59   : > { %693 = vst [vmem:[%s1167_s17 + $0x148] sm:$0xff] %v565_v59  ;;  %v579_v51 = vmax.f32 %v451_v36, 0.0  ;;  %v455_v52 = vadd.f32 1.0, %v327_v37  ;;  %v331_v53 = vadd.f32 1.0, %v203_v42  ;;  %v206_v54 = vld [vmem:[%s1144_s24 + $0x210] sm:$0xff]  ;;  %v580_v55 = vmax.f32 %v452_v40, 0.0 }
  0x5a   : > { %694 = vst [vmem:[%s1167_s17 + $0x150] sm:$0xff] %v566_v63  ;;  %v456_v56 = vadd.f32 1.0, %v328_v41  ;;  %v332_v57 = vadd.f32 1.0, %v204_v46  ;;  %v207_v58 = vld [vmem:[%s1144_s24 + $0x218] sm:$0xff]  ;;  %v581_v59 = vmax.f32 %v453_v44, 0.0  ;;  %v457_v60 = vadd.f32 1.0, %v329_v45 }
  0x5b   : > { %695 = vst [vmem:[%s1167_s17 + $0x158] sm:$0xff] %v567_v3  ;;  %v333_v61 = vadd.f32 1.0, %v205_v50  ;;  %v208_v62 = vld [vmem:[%s1144_s24 + $0x220] sm:$0xff]  ;;  %v582_v63 = vmax.f32 %v454_v48, 0.0  ;;  %v458_v0 = vadd.f32 1.0, %v330_v49  ;;  %v334_v1 = vadd.f32 1.0, %v206_v54 }
  0x5c   : > { %696 = vst [vmem:[%s1167_s17 + $0x160] sm:$0xff] %v568_v7  ;;  %v209_v2 = vld [vmem:[%s1144_s24 + $0x228] sm:$0xff]  ;;  %v583_v3 = vmax.f32 %v455_v52, 0.0  ;;  %v459_v4 = vadd.f32 1.0, %v331_v53  ;;  %v335_v5 = vadd.f32 1.0, %v207_v58  ;;  %v210_v6 = vld [vmem:[%s1144_s24 + $0x230] sm:$0xff] }
  0x5d   : > { %697 = vst [vmem:[%s1167_s17 + $0x168] sm:$0xff] %v569_v11  ;;  %v584_v7 = vmax.f32 %v456_v56, 0.0  ;;  %v460_v8 = vadd.f32 1.0, %v332_v57  ;;  %v336_v9 = vadd.f32 1.0, %v208_v62  ;;  %v211_v10 = vld [vmem:[%s1144_s24 + $0x238] sm:$0xff]  ;;  %v585_v11 = vmax.f32 %v457_v60, 0.0 }
  0x5e   : > { %698 = vst [vmem:[%s1167_s17 + $0x170] sm:$0xff] %v570_v15  ;;  %v461_v12 = vadd.f32 1.0, %v333_v61  ;;  %v337_v13 = vadd.f32 1.0, %v209_v2  ;;  %v212_v14 = vld [vmem:[%s1144_s24 + $0x240] sm:$0xff]  ;;  %v586_v15 = vmax.f32 %v458_v0, 0.0  ;;  %v462_v16 = vadd.f32 1.0, %v334_v1 }
  0x5f   : > { %699 = vst [vmem:[%s1167_s17 + $0x178] sm:$0xff] %v571_v19  ;;  %v338_v17 = vadd.f32 1.0, %v210_v6  ;;  %v213_v18 = vld [vmem:[%s1144_s24 + $0x248] sm:$0xff]  ;;  %v587_v19 = vmax.f32 %v459_v4, 0.0  ;;  %v463_v20 = vadd.f32 1.0, %v335_v5  ;;  %v339_v21 = vadd.f32 1.0, %v211_v10 }
  0x60   : > { %700 = vst [vmem:[%s1167_s17 + $0x180] sm:$0xff] %v572_v23  ;;  %v214_v22 = vld [vmem:[%s1144_s24 + $0x250] sm:$0xff]  ;;  %v588_v23 = vmax.f32 %v460_v8, 0.0  ;;  %v464_v24 = vadd.f32 1.0, %v336_v9  ;;  %v340_v25 = vadd.f32 1.0, %v212_v14  ;;  %v215_v26 = vld [vmem:[%s1144_s24 + $0x258] sm:$0xff] }
  0x61   : > { %701 = vst [vmem:[%s1167_s17 + $0x188] sm:$0xff] %v573_v27  ;;  %v589_v27 = vmax.f32 %v461_v12, 0.0  ;;  %v465_v28 = vadd.f32 1.0, %v337_v13  ;;  %v341_v29 = vadd.f32 1.0, %v213_v18  ;;  %v216_v30 = vld [vmem:[%s1144_s24 + $0x260] sm:$0xff]  ;;  %v466_v32 = vadd.f32 1.0, %v338_v17 }
  0x62   : > { %702 = vst [vmem:[%s1167_s17 + $0x190] sm:$0xff] %v574_v31  ;;  %v590_v31 = vmax.f32 %v462_v16, 0.0  ;;  %v342_v33 = vadd.f32 1.0, %v214_v22  ;;  %v217_v34 = vld [vmem:[%s1144_s24 + $0x268] sm:$0xff]  ;;  %v467_v36 = vadd.f32 1.0, %v339_v21  ;;  %v343_v37 = vadd.f32 1.0, %v215_v26 }
  0x63   : > { %703 = vst [vmem:[%s1167_s17 + $0x198] sm:$0xff] %v575_v35  ;;  %v591_v35 = vmax.f32 %v463_v20, 0.0  ;;  %v218_v38 = vld [vmem:[%s1144_s24 + $0x270] sm:$0xff]  ;;  %v468_v40 = vadd.f32 1.0, %v340_v25  ;;  %v344_v41 = vadd.f32 1.0, %v216_v30  ;;  %v219_v42 = vld [vmem:[%s1144_s24 + $0x278] sm:$0xff] }
  0x64   : > { %704 = vst [vmem:[%s1167_s17 + $0x1a0] sm:$0xff] %v576_v39  ;;  %v592_v39 = vmax.f32 %v464_v24, 0.0  ;;  %v469_v44 = vadd.f32 1.0, %v341_v29  ;;  %v345_v45 = vadd.f32 1.0, %v217_v34  ;;  %v220_v46 = vld [vmem:[%s1144_s24 + $0x280] sm:$0xff]  ;;  %v470_v48 = vadd.f32 1.0, %v342_v33 }
  0x65   : > { %705 = vst [vmem:[%s1167_s17 + $0x1a8] sm:$0xff] %v577_v43  ;;  %v593_v43 = vmax.f32 %v465_v28, 0.0  ;;  %v346_v49 = vadd.f32 1.0, %v218_v38  ;;  %v221_v50 = vld [vmem:[%s1144_s24 + $0x288] sm:$0xff]  ;;  %v471_v52 = vadd.f32 1.0, %v343_v37  ;;  %v347_v53 = vadd.f32 1.0, %v219_v42 }
  0x66   : > { %706 = vst [vmem:[%s1167_s17 + $0x1b0] sm:$0xff] %v578_v47  ;;  %v594_v47 = vmax.f32 %v466_v32, 0.0  ;;  %v222_v54 = vld [vmem:[%s1144_s24 + $0x290] sm:$0xff]  ;;  %v472_v56 = vadd.f32 1.0, %v344_v41  ;;  %v348_v57 = vadd.f32 1.0, %v220_v46  ;;  %v223_v58 = vld [vmem:[%s1144_s24 + $0x298] sm:$0xff] }
  0x67   : > { %707 = vst [vmem:[%s1167_s17 + $0x1b8] sm:$0xff] %v579_v51  ;;  %v595_v51 = vmax.f32 %v467_v36, 0.0  ;;  %v473_v60 = vadd.f32 1.0, %v345_v45  ;;  %v349_v61 = vadd.f32 1.0, %v221_v50  ;;  %v224_v62 = vld [vmem:[%s1144_s24 + $0x2a0] sm:$0xff]  ;;  %v474_v0 = vadd.f32 1.0, %v346_v49 }
  0x68   : > { %708 = vst [vmem:[%s1167_s17 + $0x1c0] sm:$0xff] %v580_v55  ;;  %v596_v55 = vmax.f32 %v468_v40, 0.0  ;;  %v350_v1 = vadd.f32 1.0, %v222_v54  ;;  %v225_v2 = vld [vmem:[%s1144_s24 + $0x2a8] sm:$0xff]  ;;  %v475_v4 = vadd.f32 1.0, %v347_v53  ;;  %v351_v5 = vadd.f32 1.0, %v223_v58 }
  0x69   : > { %709 = vst [vmem:[%s1167_s17 + $0x1c8] sm:$0xff] %v581_v59  ;;  %v597_v59 = vmax.f32 %v469_v44, 0.0  ;;  %v226_v6 = vld [vmem:[%s1144_s24 + $0x2b0] sm:$0xff]  ;;  %v476_v8 = vadd.f32 1.0, %v348_v57  ;;  %v352_v9 = vadd.f32 1.0, %v224_v62  ;;  %v227_v10 = vld [vmem:[%s1144_s24 + $0x2b8] sm:$0xff] }
  0x6a   : > { %710 = vst [vmem:[%s1167_s17 + $0x1d0] sm:$0xff] %v582_v63  ;;  %v598_v63 = vmax.f32 %v470_v48, 0.0  ;;  %v477_v12 = vadd.f32 1.0, %v349_v61  ;;  %v353_v13 = vadd.f32 1.0, %v225_v2  ;;  %v228_v14 = vld [vmem:[%s1144_s24 + $0x2c0] sm:$0xff]  ;;  %v478_v16 = vadd.f32 1.0, %v350_v1 }
  0x6b   : > { %711 = vst [vmem:[%s1167_s17 + $0x1d8] sm:$0xff] %v583_v3  ;;  %v599_v3 = vmax.f32 %v471_v52, 0.0  ;;  %v354_v17 = vadd.f32 1.0, %v226_v6  ;;  %v229_v18 = vld [vmem:[%s1144_s24 + $0x2c8] sm:$0xff]  ;;  %v479_v20 = vadd.f32 1.0, %v351_v5  ;;  %v355_v21 = vadd.f32 1.0, %v227_v10 }
  0x6c   : > { %712 = vst [vmem:[%s1167_s17 + $0x1e0] sm:$0xff] %v584_v7  ;;  %v600_v7 = vmax.f32 %v472_v56, 0.0  ;;  %v230_v22 = vld [vmem:[%s1144_s24 + $0x2d0] sm:$0xff]  ;;  %v480_v24 = vadd.f32 1.0, %v352_v9  ;;  %v356_v25 = vadd.f32 1.0, %v228_v14  ;;  %v231_v26 = vld [vmem:[%s1144_s24 + $0x2d8] sm:$0xff] }
  0x6d   : > { %713 = vst [vmem:[%s1167_s17 + $0x1e8] sm:$0xff] %v585_v11  ;;  %v601_v11 = vmax.f32 %v473_v60, 0.0  ;;  %v481_v28 = vadd.f32 1.0, %v353_v13  ;;  %v357_v29 = vadd.f32 1.0, %v229_v18  ;;  %v232_v30 = vld [vmem:[%s1144_s24 + $0x2e0] sm:$0xff]  ;;  %v482_v32 = vadd.f32 1.0, %v354_v17 }
  0x6e   : > { %714 = vst [vmem:[%s1167_s17 + $0x1f0] sm:$0xff] %v586_v15  ;;  %v602_v15 = vmax.f32 %v474_v0, 0.0  ;;  %v358_v33 = vadd.f32 1.0, %v230_v22  ;;  %v233_v34 = vld [vmem:[%s1144_s24 + $0x2e8] sm:$0xff]  ;;  %v483_v36 = vadd.f32 1.0, %v355_v21  ;;  %v359_v37 = vadd.f32 1.0, %v231_v26 }
  0x6f   : > { %715 = vst [vmem:[%s1167_s17 + $0x1f8] sm:$0xff] %v587_v19  ;;  %v603_v19 = vmax.f32 %v475_v4, 0.0  ;;  %v234_v38 = vld [vmem:[%s1144_s24 + $0x2f0] sm:$0xff]  ;;  %v484_v40 = vadd.f32 1.0, %v356_v25  ;;  %v360_v41 = vadd.f32 1.0, %v232_v30  ;;  %v235_v42 = vld [vmem:[%s1144_s24 + $0x2f8] sm:$0xff] }
  0x70   : > { %716 = vst [vmem:[%s1167_s17 + $0x200] sm:$0xff] %v588_v23  ;;  %v604_v23 = vmax.f32 %v476_v8, 0.0  ;;  %v485_v44 = vadd.f32 1.0, %v357_v29  ;;  %v361_v45 = vadd.f32 1.0, %v233_v34  ;;  %v236_v46 = vld [vmem:[%s1144_s24 + $0x300] sm:$0xff]  ;;  %v486_v48 = vadd.f32 1.0, %v358_v33 }
  0x71   : > { %717 = vst [vmem:[%s1167_s17 + $0x208] sm:$0xff] %v589_v27  ;;  %v605_v27 = vmax.f32 %v477_v12, 0.0  ;;  %v362_v49 = vadd.f32 1.0, %v234_v38  ;;  %v237_v50 = vld [vmem:[%s1144_s24 + $0x308] sm:$0xff]  ;;  %v487_v52 = vadd.f32 1.0, %v359_v37  ;;  %v363_v53 = vadd.f32 1.0, %v235_v42 }
  0x72   : > { %718 = vst [vmem:[%s1167_s17 + $0x210] sm:$0xff] %v590_v31  ;;  %v606_v31 = vmax.f32 %v478_v16, 0.0  ;;  %v238_v54 = vld [vmem:[%s1144_s24 + $0x310] sm:$0xff]  ;;  %v488_v56 = vadd.f32 1.0, %v360_v41  ;;  %v364_v57 = vadd.f32 1.0, %v236_v46  ;;  %v239_v58 = vld [vmem:[%s1144_s24 + $0x318] sm:$0xff] }
  0x73   : > { %719 = vst [vmem:[%s1167_s17 + $0x218] sm:$0xff] %v591_v35  ;;  %v607_v35 = vmax.f32 %v479_v20, 0.0  ;;  %v489_v60 = vadd.f32 1.0, %v361_v45  ;;  %v365_v61 = vadd.f32 1.0, %v237_v50  ;;  %v240_v62 = vld [vmem:[%s1144_s24 + $0x320] sm:$0xff]  ;;  %v490_v0 = vadd.f32 1.0, %v362_v49 }
  0x74   : > { %720 = vst [vmem:[%s1167_s17 + $0x220] sm:$0xff] %v592_v39  ;;  %v608_v39 = vmax.f32 %v480_v24, 0.0  ;;  %v366_v1 = vadd.f32 1.0, %v238_v54  ;;  %v241_v2 = vld [vmem:[%s1144_s24 + $0x328] sm:$0xff]  ;;  %v491_v4 = vadd.f32 1.0, %v363_v53  ;;  %v367_v5 = vadd.f32 1.0, %v239_v58 }
  0x75   : > { %721 = vst [vmem:[%s1167_s17 + $0x228] sm:$0xff] %v593_v43  ;;  %v609_v43 = vmax.f32 %v481_v28, 0.0  ;;  %v242_v6 = vld [vmem:[%s1144_s24 + $0x330] sm:$0xff]  ;;  %v492_v8 = vadd.f32 1.0, %v364_v57  ;;  %v368_v9 = vadd.f32 1.0, %v240_v62  ;;  %v243_v10 = vld [vmem:[%s1144_s24 + $0x338] sm:$0xff] }
  0x76   : > { %722 = vst [vmem:[%s1167_s17 + $0x230] sm:$0xff] %v594_v47  ;;  %v610_v47 = vmax.f32 %v482_v32, 0.0  ;;  %v493_v12 = vadd.f32 1.0, %v365_v61  ;;  %v369_v13 = vadd.f32 1.0, %v241_v2  ;;  %v244_v14 = vld [vmem:[%s1144_s24 + $0x340] sm:$0xff]  ;;  %v494_v16 = vadd.f32 1.0, %v366_v1 }
  0x77   : > { %723 = vst [vmem:[%s1167_s17 + $0x238] sm:$0xff] %v595_v51  ;;  %v611_v51 = vmax.f32 %v483_v36, 0.0  ;;  %v370_v17 = vadd.f32 1.0, %v242_v6  ;;  %v245_v18 = vld [vmem:[%s1144_s24 + $0x348] sm:$0xff]  ;;  %v495_v20 = vadd.f32 1.0, %v367_v5  ;;  %v371_v21 = vadd.f32 1.0, %v243_v10 }
  0x78   : > { %724 = vst [vmem:[%s1167_s17 + $0x240] sm:$0xff] %v596_v55  ;;  %v612_v55 = vmax.f32 %v484_v40, 0.0  ;;  %v246_v22 = vld [vmem:[%s1144_s24 + $0x350] sm:$0xff]  ;;  %v496_v24 = vadd.f32 1.0, %v368_v9  ;;  %v372_v25 = vadd.f32 1.0, %v244_v14  ;;  %v247_v26 = vld [vmem:[%s1144_s24 + $0x358] sm:$0xff] }
  0x79   : > { %725 = vst [vmem:[%s1167_s17 + $0x248] sm:$0xff] %v597_v59  ;;  %v613_v59 = vmax.f32 %v485_v44, 0.0  ;;  %v497_v28 = vadd.f32 1.0, %v369_v13  ;;  %v373_v29 = vadd.f32 1.0, %v245_v18  ;;  %v248_v30 = vld [vmem:[%s1144_s24 + $0x360] sm:$0xff]  ;;  %v498_v32 = vadd.f32 1.0, %v370_v17 }
  0x7a   : > { %726 = vst [vmem:[%s1167_s17 + $0x250] sm:$0xff] %v598_v63  ;;  %v614_v63 = vmax.f32 %v486_v48, 0.0  ;;  %v374_v33 = vadd.f32 1.0, %v246_v22  ;;  %v249_v34 = vld [vmem:[%s1144_s24 + $0x368] sm:$0xff]  ;;  %v499_v36 = vadd.f32 1.0, %v371_v21  ;;  %v375_v37 = vadd.f32 1.0, %v247_v26 }
  0x7b   : > { %727 = vst [vmem:[%s1167_s17 + $0x258] sm:$0xff] %v599_v3  ;;  %v615_v3 = vmax.f32 %v487_v52, 0.0  ;;  %v250_v38 = vld [vmem:[%s1144_s24 + $0x370] sm:$0xff]  ;;  %v500_v40 = vadd.f32 1.0, %v372_v25  ;;  %v376_v41 = vadd.f32 1.0, %v248_v30  ;;  %v251_v42 = vld [vmem:[%s1144_s24 + $0x378] sm:$0xff] }
  0x7c   : > { %728 = vst [vmem:[%s1167_s17 + $0x260] sm:$0xff] %v600_v7  ;;  %v616_v7 = vmax.f32 %v488_v56, 0.0  ;;  %v501_v44 = vadd.f32 1.0, %v373_v29  ;;  %v377_v45 = vadd.f32 1.0, %v249_v34  ;;  %v252_v46 = vld [vmem:[%s1144_s24 + $0x380] sm:$0xff]  ;;  %v502_v48 = vadd.f32 1.0, %v374_v33 }
  0x7d   : > { %729 = vst [vmem:[%s1167_s17 + $0x268] sm:$0xff] %v601_v11  ;;  %v617_v11 = vmax.f32 %v489_v60, 0.0  ;;  %v378_v49 = vadd.f32 1.0, %v250_v38  ;;  %v253_v50 = vld [vmem:[%s1144_s24 + $0x388] sm:$0xff]  ;;  %v503_v52 = vadd.f32 1.0, %v375_v37  ;;  %v379_v53 = vadd.f32 1.0, %v251_v42 }
  0x7e   : > { %730 = vst [vmem:[%s1167_s17 + $0x270] sm:$0xff] %v602_v15  ;;  %v618_v15 = vmax.f32 %v490_v0, 0.0  ;;  %v254_v54 = vld [vmem:[%s1144_s24 + $0x390] sm:$0xff]  ;;  %v504_v56 = vadd.f32 1.0, %v376_v41  ;;  %v380_v57 = vadd.f32 1.0, %v252_v46  ;;  %v255_v58 = vld [vmem:[%s1144_s24 + $0x398] sm:$0xff] }
  0x7f   : > { %731 = vst [vmem:[%s1167_s17 + $0x278] sm:$0xff] %v603_v19  ;;  %v619_v19 = vmax.f32 %v491_v4, 0.0  ;;  %v505_v60 = vadd.f32 1.0, %v377_v45  ;;  %v381_v61 = vadd.f32 1.0, %v253_v50  ;;  %v256_v62 = vld [vmem:[%s1144_s24 + $0x3a0] sm:$0xff]  ;;  %v506_v0 = vadd.f32 1.0, %v378_v49 }
  0x80   : > { %732 = vst [vmem:[%s1167_s17 + $0x280] sm:$0xff] %v604_v23  ;;  %v620_v23 = vmax.f32 %v492_v8, 0.0  ;;  %v382_v1 = vadd.f32 1.0, %v254_v54  ;;  %v257_v2 = vld [vmem:[%s1144_s24 + $0x3a8] sm:$0xff]  ;;  %v507_v4 = vadd.f32 1.0, %v379_v53  ;;  %v383_v5 = vadd.f32 1.0, %v255_v58 }
  0x81   : > { %733 = vst [vmem:[%s1167_s17 + $0x288] sm:$0xff] %v605_v27  ;;  %v621_v27 = vmax.f32 %v493_v12, 0.0  ;;  %v258_v6 = vld [vmem:[%s1144_s24 + $0x3b0] sm:$0xff]  ;;  %v508_v8 = vadd.f32 1.0, %v380_v57  ;;  %v384_v9 = vadd.f32 1.0, %v256_v62  ;;  %v259_v10 = vld [vmem:[%s1144_s24 + $0x3b8] sm:$0xff] }
  0x82   : > { %734 = vst [vmem:[%s1167_s17 + $0x290] sm:$0xff] %v606_v31  ;;  %v622_v31 = vmax.f32 %v494_v16, 0.0  ;;  %v509_v12 = vadd.f32 1.0, %v381_v61  ;;  %v385_v13 = vadd.f32 1.0, %v257_v2  ;;  %v260_v14 = vld [vmem:[%s1144_s24 + $0x3c0] sm:$0xff]  ;;  %v510_v16 = vadd.f32 1.0, %v382_v1 }
  0x83   : > { %735 = vst [vmem:[%s1167_s17 + $0x298] sm:$0xff] %v607_v35  ;;  %v623_v35 = vmax.f32 %v495_v20, 0.0  ;;  %v386_v17 = vadd.f32 1.0, %v258_v6  ;;  %v261_v18 = vld [vmem:[%s1144_s24 + $0x3c8] sm:$0xff]  ;;  %v511_v20 = vadd.f32 1.0, %v383_v5  ;;  %v387_v21 = vadd.f32 1.0, %v259_v10 }
  0x84   : > { %736 = vst [vmem:[%s1167_s17 + $0x2a0] sm:$0xff] %v608_v39  ;;  %v624_v39 = vmax.f32 %v496_v24, 0.0  ;;  %v262_v22 = vld [vmem:[%s1144_s24 + $0x3d0] sm:$0xff]  ;;  %v512_v24 = vadd.f32 1.0, %v384_v9  ;;  %v388_v25 = vadd.f32 1.0, %v260_v14  ;;  %v263_v26 = vld [vmem:[%s1144_s24 + $0x3d8] sm:$0xff] }
  0x85   : > { %737 = vst [vmem:[%s1167_s17 + $0x2a8] sm:$0xff] %v609_v43  ;;  %v625_v43 = vmax.f32 %v497_v28, 0.0  ;;  %v513_v28 = vadd.f32 1.0, %v385_v13  ;;  %v389_v29 = vadd.f32 1.0, %v261_v18  ;;  %v264_v30 = vld [vmem:[%s1144_s24 + $0x3e0] sm:$0xff]  ;;  %v390_v33 = vadd.f32 1.0, %v262_v22 }
  0x86   : > { %738 = vst [vmem:[%s1167_s17 + $0x2b0] sm:$0xff] %v610_v47  ;;  %v626_v47 = vmax.f32 %v498_v32, 0.0  ;;  %v514_v32 = vadd.f32 1.0, %v386_v17  ;;  %v265_v34 = vld [vmem:[%s1144_s24 + $0x3e8] sm:$0xff]  ;;  %v391_v37 = vadd.f32 1.0, %v263_v26  ;;  %v266_v38 = vld [vmem:[%s1144_s24 + $0x3f0] sm:$0xff] }
  0x87   : > { %739 = vst [vmem:[%s1167_s17 + $0x2b8] sm:$0xff] %v611_v51  ;;  %v627_v51 = vmax.f32 %v499_v36, 0.0  ;;  %v515_v36 = vadd.f32 1.0, %v387_v21  ;;  %v392_v41 = vadd.f32 1.0, %v264_v30  ;;  %v267_v42 = vld [vmem:[%s1144_s24 + $0x3f8] sm:$0xff]  ;;  %v393_v45 = vadd.f32 1.0, %v265_v34 }
  0x88   : > { %740 = vst [vmem:[%s1167_s17 + $0x2c0] sm:$0xff] %v612_v55  ;;  %v628_v55 = vmax.f32 %v500_v40, 0.0  ;;  %v516_v40 = vadd.f32 1.0, %v388_v25  ;;  %v642_v46 = vmax.f32 %v514_v32, 0.0  ;;  %v519_v50 = vadd.f32 1.0, %v391_v37  ;;  %s796_s29 = sshll.u32 %s793_s28, 4  ;;  %s797_s29 = int_to_ptr.hbm [resolvable:$true] %s796_s29 }
  0x89   : > { %741 = vst [vmem:[%s1167_s17 + $0x2c8] sm:$0xff] %v613_v59  ;;  %v629_v59 = vmax.f32 %v501_v44, 0.0  ;;  %v517_v44 = vadd.f32 1.0, %v389_v29  ;;  %v643_v49 = vmax.f32 %v515_v36, 0.0  ;;  %v520_v53 = vadd.f32 1.0, %v392_v41  ;;  %s781_s30 = scalar_lea.sflag [#allocation4], %s1138_s21 }
  0x8a   : > { %742 = vst [vmem:[%s1167_s17 + $0x2d0] sm:$0xff] %v614_v63  ;;  %v630_v63 = vmax.f32 %v502_v48, 0.0  ;;  %v394_v48 = vadd.f32 1.0, %v266_v38  ;;  %v647_v58 = vmax.f32 %v519_v50, 0.0  ;;  %s984_s2 = sshra.s32 %s797_s29, 4  ;;  %s990_s11 = scalar_lea.hbm %s1445_s1, 2048  ;;  %s985_s2 = int_to_ptr.hbm [resolvable:$true] %s984_s2 }
  0x8b   : > { %743 = vst [vmem:[%s1167_s17 + $0x2d8] sm:$0xff] %v615_v3  ;;  %v631_v3 = vmax.f32 %v503_v52, 0.0  ;;  %v644_v52 = vmax.f32 %v516_v40, 0.0  ;;  %v645_v54 = vmax.f32 %v517_v44, 0.0  ;;  %s986_s3 = scalar_lea.hbm %s985_s2, 1024  ;;  %p991_p0 = scmp.lt.s32.totalorder %s985_s2, %s1445_s1 }
  0x8c   : > { %744 = vst [vmem:[%s1167_s17 + $0x2e0] sm:$0xff] %v616_v7  ;;  %v632_v7 = vmax.f32 %v504_v56, 0.0  ;;  %v522_v57 = vadd.f32 1.0, %v394_v48  ;;  %p987_p6 = scmp.ne.s32.totalorder %s985_s2, %s986_s3  ;;  %p992_p1 = scmp.lt.s32.totalorder %s990_s11, %s986_s3 }
  0x8d   : > { %745 = vst [vmem:[%s1167_s17 + $0x2e8] sm:$0xff] %v617_v11  ;;  %v633_v11 = vmax.f32 %v505_v60, 0.0  ;;  %v648_v60 = vmax.f32 %v520_v53, 0.0 }
  0x8e   : > { %746 = vst [vmem:[%s1167_s17 + $0x2f0] sm:$0xff] %v618_v15  ;;  %v634_v15 = vmax.f32 %v506_v0, 0.0  ;;  %v650_v62 = vmax.f32 %v522_v57, 0.0  ;;  %p988_p9 = pnand %p987_p6, %p1102_p11  ;;  %p993_p3 = por %p992_p1, %p991_p0 }
  0x8f   : > { %747 = vst [vmem:[%s1167_s17 + $0x2f8] sm:$0xff] %v619_v19  ;;  %v635_v19 = vmax.f32 %v507_v4, 0.0 }
  0x90   : > { %748 = vst [vmem:[%s1167_s17 + $0x300] sm:$0xff] %v620_v23  ;;  %v636_v23 = vmax.f32 %v508_v8, 0.0  ;;  %p989_p13 = pneg %p988_p9 }
  0x91   : > { %749 = vst [vmem:[%s1167_s17 + $0x308] sm:$0xff] %v621_v27  ;;  %v637_v27 = vmax.f32 %v509_v12, 0.0 }
  0x92   : > { %750 = vst [vmem:[%s1167_s17 + $0x310] sm:$0xff] %v622_v31  ;;  %v638_v31 = vmax.f32 %v510_v16, 0.0  ;;  %p994_p4 = pnand %p993_p3, %p989_p13 }
  0x93   : > { %751 = vst [vmem:[%s1167_s17 + $0x318] sm:$0xff] %v623_v35  ;;  %v639_v35 = vmax.f32 %v511_v20, 0.0 }
  0x94   : > { %752 = vst [vmem:[%s1167_s17 + $0x320] sm:$0xff] %v624_v39  ;;  %v640_v39 = vmax.f32 %v512_v24, 0.0 }
  0x95   : > { %753 = vst [vmem:[%s1167_s17 + $0x328] sm:$0xff] %v625_v43  ;;  %v641_v43 = vmax.f32 %v513_v28, 0.0 }
  0x96   : > { %754 = vst [vmem:[%s1167_s17 + $0x330] sm:$0xff] %v626_v47  ;;  %v518_v47 = vadd.f32 1.0, %v390_v33 }
  0x97   : > { %755 = vst [vmem:[%s1167_s17 + $0x338] sm:$0xff] %v627_v51  ;;  %v395_v51 = vadd.f32 1.0, %v267_v42 }
  0x98   : > { %756 = vst [vmem:[%s1167_s17 + $0x340] sm:$0xff] %v628_v55  ;;  %v521_v55 = vadd.f32 1.0, %v393_v45  ;;  %v646_v56 = vmax.f32 %v518_v47, 0.0 }
  0x99   : > { %757 = vst [vmem:[%s1167_s17 + $0x348] sm:$0xff] %v629_v59  ;;  %v523_v59 = vadd.f32 1.0, %v395_v51 }
  0x9a   : > { %758 = vst [vmem:[%s1167_s17 + $0x350] sm:$0xff] %v630_v63  ;;  %v649_v61 = vmax.f32 %v521_v55, 0.0 }
  0x9b   : > { %759 = vst [vmem:[%s1167_s17 + $0x358] sm:$0xff] %v631_v3  ;;  %v651_v63 = vmax.f32 %v523_v59, 0.0 }
  0x9c   : > { %760 = vst [vmem:[%s1167_s17 + $0x360] sm:$0xff] %v632_v7 }
  0x9d   : > { %761 = vst [vmem:[%s1167_s17 + $0x368] sm:$0xff] %v633_v11 }
  0x9e   : > { %762 = vst [vmem:[%s1167_s17 + $0x370] sm:$0xff] %v634_v15 }
  0x9f   : > { %763 = vst [vmem:[%s1167_s17 + $0x378] sm:$0xff] %v635_v19 }
  0xa0   : > { %764 = vst [vmem:[%s1167_s17 + $0x380] sm:$0xff] %v636_v23 }
  0xa1   : > { %765 = vst [vmem:[%s1167_s17 + $0x388] sm:$0xff] %v637_v27 }
  0xa2   : > { %766 = vst [vmem:[%s1167_s17 + $0x390] sm:$0xff] %v638_v31 }
  0xa3   : > { %767 = vst [vmem:[%s1167_s17 + $0x398] sm:$0xff] %v639_v35 }
  0xa4   : > { %768 = vst [vmem:[%s1167_s17 + $0x3a0] sm:$0xff] %v640_v39 }
  0xa5   : > { %769 = vst [vmem:[%s1167_s17 + $0x3a8] sm:$0xff] %v641_v43 }
  0xa6   : > { %770 = vst [vmem:[%s1167_s17 + $0x3b0] sm:$0xff] %v642_v46 }
  0xa7   : > { %771 = vst [vmem:[%s1167_s17 + $0x3b8] sm:$0xff] %v643_v49 }
  0xa8   : > { %772 = vst [vmem:[%s1167_s17 + $0x3c0] sm:$0xff] %v644_v52 }
  0xa9   : > { %773 = vst [vmem:[%s1167_s17 + $0x3c8] sm:$0xff] %v645_v54 }
  0xaa   : > { %774 = vst [vmem:[%s1167_s17 + $0x3d0] sm:$0xff] %v646_v56 }
  0xab   : > { %775 = vst [vmem:[%s1167_s17 + $0x3d8] sm:$0xff] %v647_v58 }
  0xac   : > { %776 = vst [vmem:[%s1167_s17 + $0x3e0] sm:$0xff] %v648_v60 }
  0xad   : > { %777 = vst [vmem:[%s1167_s17 + $0x3e8] sm:$0xff] %v649_v61 }
  0xae   : > { %778 = vst [vmem:[%s1167_s17 + $0x3f0] sm:$0xff] %v650_v62 }
  0xaf   : > { %779 = vst [vmem:[%s1167_s17 + $0x3f8] sm:$0xff] %v651_v63 }
  0xb0   : > { %997 = shalt.err (!%p994_p4)
}
  0xb1   : > { %s1040_s16 = smov 1024   ;;  %s1041_s20 = smov 64  }
  0xb2   : > { %892 = dma.vmem_to_hbm [thread:$0]  (%p1102_p11), %s795_s10, 16384, %s797_s29, %s781_s30, %s1040_s16, %s1040_s16, %s1041_s20  }
  0xb3 PF: > { %s811_s21 = sand.u32 1, %s1024_s6   ;;  %p1451_p7 = scmp.ge.s32.totalorder %s1036_s9, 2 }
  0xb4   : > { %s812_s22 = scalar_lea.sflag [#allocation4], %s811_s21 }
  0xb5   : > { %p899_p5 = pnand %p1451_p7, %p1106_p12 }
  0xb7   : > { %p900_p8 = pneg %p899_p5 }
  0xb9   : > { %1019 = dma.done.wait (%p900_p8), %s812_s22, 16384  }
  0xba   : > { %1021 = vsyncadd (%p900_p8), %s812_s22, 4294950912  ;;  %p14_p10 = scmp.ge.s32.totalorder %s1077_s12, 4   ;;  %s1452_s6 = smov %s1028_s7 }
  0xbb   : > { %s1453_s7 = smov %s1032_s8  ;;  %s1454_s8 = smov %s1089_s15 }
  0xbc   : > { %s1455_s9 = smov %s1077_s12  ;;  %16 = sbr.rel (!%p14_p10) target bundleno = 5 (0x5), region = 69 }
  0xc1   :  { %818 = vsyncpa [#allocation3], 1 }
  0xc2   :  { %820 = vsyncpa [#allocation3 + $0x1], 1 }
  0xc3   :  { %821 = vsyncpa [#allocation4], 1 }
  0xc4   :  { %823 = vsyncpa [#allocation4 + $0x1], 1 }

</bundles_post_ra>
